<compile_context>
chip_gen: v6e
topology: v6e:2x2x1
jax: 0.10.0
libtpu: 0.0.40
codegen_flags: <defaults>
</compile_context>

<pallas_src>
import jax
import jax.numpy as jnp
from jax.experimental import pallas as pl
from jax.experimental.pallas import tpu as pltpu

NUM_RACES = 7
LEAKY_SLOPE = 0.01
BN_EPS = 1e-5
LANE = 128


def _leaky(z):
    return jnp.where(z >= 0, z, LEAKY_SLOPE * z)


def _round_up(n, m):
    return ((n + m - 1) // m) * m


# ---------------------------------------------------------------------------
# Kernel: x -> Linear+LReLU -> 3x(Linear+LReLU) -> Linear
# (all BatchNorms already folded into the weights/biases by the wrapper)
# ---------------------------------------------------------------------------
def gender_classifier_kernel(x_ref, w1_ref, b1_ref, wh_ref, bh_ref,
                             w5_ref, b5_ref, out_ref):
    cdtype = w1_ref.dtype  # matmul-input dtype (bf16 or f32)

    x = x_ref[...]
    h = jnp.dot(x.astype(cdtype), w1_ref[...],
                preferred_element_type=jnp.float32) + b1_ref[...]
    h = _leaky(h)

    def hidden_layer(i, h):
        z = jnp.dot(h.astype(cdtype), wh_ref[i],
                    preferred_element_type=jnp.float32) + bh_ref[i]
        return _leaky(z)

    h = jax.lax.fori_loop(0, 3, hidden_layer, h, unroll=True)

    out = jnp.dot(h.astype(cdtype), w5_ref[...],
                  preferred_element_type=jnp.float32) + b5_ref[...]
    out_ref[...] = out.astype(out_ref.dtype)


# ---------------------------------------------------------------------------
# Wrapper-side parameter preparation (BN folding, padding, packing, casting)
# ---------------------------------------------------------------------------
def fold_params(raw):
    """Fold eval-mode BN1d layers into the adjacent Linear weights/biases (f32)."""
    def scale_shift(gamma, beta, mean, var, eps=BN_EPS):
        s = gamma / jnp.sqrt(var + eps)
        return s, beta - mean * s

    s0, t0 = scale_shift(*raw["bn0"])
    w1, b1 = raw["lin1"]
    s1, t1 = scale_shift(*raw["bn1"])
    # BN0 folds into the rows of W1 (and t0 into b1); BN1 folds into its columns.
    w1f = (s0[:, None] * w1) * s1[None, :]
    b1f = (b1 + t0 @ w1) * s1 + t1

    hidden = []
    for k in (2, 3, 4):
        w, b = raw["lin%d" % k]
        sk, tk = scale_shift(*raw["bn%d" % k])
        hidden.append((w * sk[None, :], b * sk + tk))

    w5, b5 = raw["lin5"]
    return (w1f, b1f), hidden, (w5, b5)


def prepare_kernel_params(raw, use_bf16=True):
    """Fold BN, zero-pad feature dims to the 128-lane width, pack the three hidden
    layers into stacked refs, and optionally cast matmul weights to bf16."""
    (w1, b1), hidden, (w5, b5) = fold_params(raw)
    num_verb, hid = w1.shape

    f_in = _round_up(num_verb, LANE)
    f_hid = _round_up(hid, LANE)
    f_out = _round_up(NUM_RACES, LANE)

    def pad_w(w, rows, cols):
        return jnp.pad(w, ((0, rows - w.shape[0]), (0, cols - w.shape[1])))

    def pad_b(b, cols):
        return jnp.pad(b, (0, cols - b.shape[0]))[None, :]

    wdtype = jnp.bfloat16 if use_bf16 else jnp.float32
    w1p = pad_w(w1, f_in, f_hid).astype(wdtype)
    b1p = pad_b(b1, f_hid).astype(jnp.float32)
    whp = jnp.stack([pad_w(w, f_hid, f_hid) for w, _ in hidden]).astype(wdtype)
    bhp = jnp.stack([pad_b(b, f_hid) for _, b in hidden]).astype(jnp.float32)
    w5p = pad_w(w5, f_hid, f_out).astype(wdtype)
    b5p = pad_b(b5, f_out).astype(jnp.float32)

    return (w1p, b1p, whp, bhp, w5p, b5p), (f_in, f_hid, f_out)


def gender_classifier_forward(x, raw_params, *, use_bf16=True, block_batch=256):
    B, num_verb = x.shape
    kparams, (f_in, f_hid, f_out) = prepare_kernel_params(raw_params, use_bf16)

    tb = min(block_batch, _round_up(B, 8))
    b_pad = _round_up(B, tb)

    x_p = jnp.pad(x.astype(jnp.float32),
                  ((0, b_pad - B), (0, f_in - num_verb)))

    flops = 2 * b_pad * (f_in * f_hid + 3 * f_hid * f_hid + f_hid * f_out)
    bytes_accessed = int(
        x_p.size * x_p.dtype.itemsize
        + sum(int(p.size) * p.dtype.itemsize for p in kparams)
        + b_pad * f_out * 4)

    out = pl.pallas_call(
        gender_classifier_kernel,
        out_shape=jax.ShapeDtypeStruct((b_pad, f_out), jnp.float32),
        grid_spec=pltpu.PrefetchScalarGridSpec(
            num_scalar_prefetch=0,
            grid=(b_pad // tb,),
            in_specs=[
                pl.BlockSpec((tb, f_in), lambda i: (i, 0)),            # x tile
                pl.BlockSpec((f_in, f_hid), lambda i: (0, 0)),         # W1 (resident)
                pl.BlockSpec((1, f_hid), lambda i: (0, 0)),            # b1
                pl.BlockSpec((3, f_hid, f_hid), lambda i: (0, 0, 0)),  # W2..W4 packed
                pl.BlockSpec((3, 1, f_hid), lambda i: (0, 0, 0)),      # b2..b4 packed
                pl.BlockSpec((f_hid, f_out), lambda i: (0, 0)),        # W5
                pl.BlockSpec((1, f_out), lambda i: (0, 0)),            # b5
            ],
            out_specs=pl.BlockSpec((tb, f_out), lambda i: (i, 0)),
        ),
        compiler_params=pltpu.CompilerParams(
            dimension_semantics=("parallel",)),
        cost_estimate=pl.CostEstimate(
            flops=flops, transcendentals=0, bytes_accessed=bytes_accessed),
    )(x_p, *kparams)

    return out[:B, :NUM_RACES]


# ---------------------------------------------------------------------------
# Synthetic parameters + references
# ---------------------------------------------------------------------------
def init_params(key, num_verb, hid_size):
    """Deterministic synthetic raw parameters matching the PyTorch module."""
    keys = jax.random.split(key, 30)
    ki = iter(keys)

    def lin(fin, fout):
        # stored as (in, out); forward computes h @ W + b (== PyTorch x @ W.T + b)
        w = jax.random.normal(next(ki), (fin, fout), jnp.float32) / jnp.sqrt(fin)
        b = 0.01 * jax.random.normal(next(ki), (fout,), jnp.float32)
        return w, b

    def bn(f):
        gamma = 1.0 + 0.1 * jax.random.normal(next(ki), (f,), jnp.float32)
        beta = 0.1 * jax.random.normal(next(ki), (f,), jnp.float32)
        mean = 0.1 * jax.random.normal(next(ki), (f,), jnp.float32)
        var = jnp.abs(1.0 + 0.1 * jax.random.normal(next(ki), (f,), jnp.float32))
        return gamma, beta, mean, var

    raw = {}
    raw["bn0"] = bn(num_verb)
    raw["lin1"] = lin(num_verb, hid_size)
    raw["bn1"] = bn(hid_size)
    raw["lin2"] = lin(hid_size, hid_size)
    raw["bn2"] = bn(hid_size)
    raw["lin3"] = lin(hid_size, hid_size)
    raw["bn3"] = bn(hid_size)
    raw["lin4"] = lin(hid_size, hid_size)
    raw["bn4"] = bn(hid_size)
    raw["lin5"] = lin(hid_size, NUM_RACES)
    return raw


def _bn_eval(x, gamma, beta, mean, var, eps=BN_EPS):
    return (x - mean) / jnp.sqrt(var + eps) * gamma + beta


def reference_module(x, raw):
    """Exact eval-mode module semantics in f32 (BN applied unfolded)."""
    h = _bn_eval(x, *raw["bn0"])
    w1, b1 = raw["lin1"]; h = _leaky(_bn_eval(h @ w1 + b1, *raw["bn1"]))
    w2, b2 = raw["lin2"]; h = _leaky(_bn_eval(h @ w2 + b2, *raw["bn2"]))
    w3, b3 = raw["lin3"]; h = _leaky(_bn_eval(h @ w3 + b3, *raw["bn3"]))
    w4, b4 = raw["lin4"]; h = _leaky(_bn_eval(h @ w4 + b4, *raw["bn4"]))
    w5, b5 = raw["lin5"]
    return h @ w5 + b5


def reference_matched_precision(x, raw):
    """Folded-BN reference with the same bf16-matmul / f32-accumulate casts as the kernel."""
    (w1, b1), hidden, (w5, b5) = fold_params(raw)

    def mm(h, w):
        return jnp.dot(h.astype(jnp.bfloat16), w.astype(jnp.bfloat16),
                       preferred_element_type=jnp.float32)

    h = _leaky(mm(x, w1) + b1)
    for w, b in hidden:
        h = _leaky(mm(h, w) + b)
    return mm(h, w5) + b5


if __name__ == "__main__":
    batch = 8
    num_verb = 32   # args-equivalent: number of verbs
    hid_size = 32   # args.hid_size

    key = jax.random.PRNGKey(0)
    k_x, k_p = jax.random.split(key)
    x = jax.random.normal(k_x, (batch, num_verb), jnp.float32)
    raw = init_params(k_p, num_verb, hid_size)

    ref_exact = reference_module(x, raw)

    # f32-weights path: tight check against the exact (unfolded-BN) module semantics.
    out_f32 = jax.block_until_ready(
        gender_classifier_forward(x, raw, use_bf16=False))
    assert out_f32.shape == (batch, NUM_RACES)
    assert jnp.allclose(out_f32, ref_exact, atol=2e-3, rtol=2e-3), \
        "f32 kernel mismatch vs module reference"

    # bf16-matmul path (default): tight vs matched-precision reference,
    # loose vs exact f32 reference (precision-only difference).
    out_bf16 = jax.block_until_ready(
        gender_classifier_forward(x, raw, use_bf16=True))
    assert out_bf16.shape == (batch, NUM_RACES)
    ref_matched = reference_matched_precision(x, raw)
    assert jnp.allclose(out_bf16, ref_matched, atol=2e-3, rtol=2e-3), \
        "bf16 kernel mismatch vs matched-precision reference"
    assert jnp.allclose(out_bf16, ref_exact, atol=1e-1, rtol=1e-1), \
        "bf16 kernel diverged from f32 module reference"

    print("KERNEL_OK")
</pallas_src>

<mosaic_0001>
module attributes {stable_mosaic.version = 11 : i64} {
  func.func @gender_classifier_kernel(%arg0: i32, %arg1: memref<8x128xf32, #tpu.memory_space<vmem>>, %arg2: memref<128x128xf32, #tpu.memory_space<vmem>>, %arg3: memref<1x128xf32, #tpu.memory_space<vmem>>, %arg4: memref<3x128x128xf32, #tpu.memory_space<vmem>>, %arg5: memref<3x1x128xf32, #tpu.memory_space<vmem>>, %arg6: memref<128x128xf32, #tpu.memory_space<vmem>>, %arg7: memref<1x128xf32, #tpu.memory_space<vmem>>, %arg8: memref<8x128xf32, #tpu.memory_space<vmem>>) attributes {dimension_semantics = [#tpu.dimension_semantics<parallel>], iteration_bounds = array<i64: 1>, scalar_prefetch = 0 : i64, scratch_operands = 0 : i64, tpu.core_type = #tpu.core_type<tc>, window_params = [{transform_indices = @transform_0, window_bounds = array<i64: 8, 128>}, {pipeline_mode = #tpu.pipeline_mode<synchronous>, transform_indices = @transform_1, window_bounds = array<i64: 128, 128>}, {pipeline_mode = #tpu.pipeline_mode<synchronous>, transform_indices = @transform_2, window_bounds = array<i64: 1, 128>}, {pipeline_mode = #tpu.pipeline_mode<synchronous>, transform_indices = @transform_3, window_bounds = array<i64: 3, 128, 128>}, {pipeline_mode = #tpu.pipeline_mode<synchronous>, transform_indices = @transform_4, window_bounds = array<i64: 3, 1, 128>}, {pipeline_mode = #tpu.pipeline_mode<synchronous>, transform_indices = @transform_5, window_bounds = array<i64: 128, 128>}, {pipeline_mode = #tpu.pipeline_mode<synchronous>, transform_indices = @transform_6, window_bounds = array<i64: 1, 128>}, {transform_indices = @transform_7, window_bounds = array<i64: 8, 128>}]} {
    %c0 = arith.constant 0 : index
    %c0_0 = arith.constant 0 : index
    %0 = vector.load %arg1[%c0, %c0_0] : memref<8x128xf32, #tpu.memory_space<vmem>>, vector<8x128xf32>
    %c0_1 = arith.constant 0 : index
    %c0_2 = arith.constant 0 : index
    %1 = vector.load %arg2[%c0_1, %c0_2] : memref<128x128xf32, #tpu.memory_space<vmem>>, vector<128x128xf32>
    %cst = arith.constant dense<0.000000e+00> : vector<8x128xf32>
    %2 = tpu.matmul %0, %1, %cst {dimension_numbers = #tpu.dot_dimension_numbers<[1], [0], [0], [1], [0, 0, 1, 1], [], []>} : vector<8x128xf32>, vector<128x128xf32>, vector<8x128xf32> -> vector<8x128xf32>
    %c0_3 = arith.constant 0 : index
    %c0_4 = arith.constant 0 : index
    %3 = vector.load %arg3[%c0_3, %c0_4] : memref<1x128xf32, #tpu.memory_space<vmem>>, vector<1x128xf32>
    %4 = vector.broadcast %3 : vector<1x128xf32> to vector<8x128xf32>
    %5 = arith.addf %2, %4 : vector<8x128xf32>
    %cst_5 = arith.constant 0.000000e+00 : f32
    %6 = vector.broadcast %cst_5 : f32 to vector<8x128xf32>
    %7 = arith.cmpf oge, %5, %6 : vector<8x128xf32>
    %cst_6 = arith.constant 0.00999999977 : f32
    %8 = vector.broadcast %cst_6 : f32 to vector<8x128xf32>
    %9 = arith.mulf %8, %5 : vector<8x128xf32>
    %10 = arith.select %7, %5, %9 : vector<8x128xi1>, vector<8x128xf32>
    %c0_i32 = arith.constant 0 : i32
    %11 = arith.index_cast %c0_i32 : i32 to index
    %c0_7 = arith.constant 0 : index
    %c0_8 = arith.constant 0 : index
    %12 = vector.load %arg4[%11, %c0_7, %c0_8] : memref<3x128x128xf32, #tpu.memory_space<vmem>>, vector<1x128x128xf32>
    %13 = vector.shape_cast %12 : vector<1x128x128xf32> to vector<128x128xf32>
    %cst_9 = arith.constant dense<0.000000e+00> : vector<8x128xf32>
    %14 = tpu.matmul %10, %13, %cst_9 {dimension_numbers = #tpu.dot_dimension_numbers<[1], [0], [0], [1], [0, 0, 1, 1], [], []>} : vector<8x128xf32>, vector<128x128xf32>, vector<8x128xf32> -> vector<8x128xf32>
    %15 = arith.index_cast %c0_i32 : i32 to index
    %c0_10 = arith.constant 0 : index
    %c0_11 = arith.constant 0 : index
    %16 = vector.load %arg5[%15, %c0_10, %c0_11] : memref<3x1x128xf32, #tpu.memory_space<vmem>>, vector<1x1x128xf32>
    %17 = vector.shape_cast %16 : vector<1x1x128xf32> to vector<1x128xf32>
    %18 = vector.broadcast %17 : vector<1x128xf32> to vector<8x128xf32>
    %19 = arith.addf %14, %18 : vector<8x128xf32>
    %cst_12 = arith.constant 0.000000e+00 : f32
    %20 = vector.broadcast %cst_12 : f32 to vector<8x128xf32>
    %21 = arith.cmpf oge, %19, %20 : vector<8x128xf32>
    %cst_13 = arith.constant 0.00999999977 : f32
    %22 = vector.broadcast %cst_13 : f32 to vector<8x128xf32>
    %23 = arith.mulf %22, %19 : vector<8x128xf32>
    %24 = arith.select %21, %19, %23 : vector<8x128xi1>, vector<8x128xf32>
    %c1_i32 = arith.constant 1 : i32
    %25 = arith.index_cast %c1_i32 : i32 to index
    %c0_14 = arith.constant 0 : index
    %c0_15 = arith.constant 0 : index
    %26 = vector.load %arg4[%25, %c0_14, %c0_15] : memref<3x128x128xf32, #tpu.memory_space<vmem>>, vector<1x128x128xf32>
    %27 = vector.shape_cast %26 : vector<1x128x128xf32> to vector<128x128xf32>
    %cst_16 = arith.constant dense<0.000000e+00> : vector<8x128xf32>
    %28 = tpu.matmul %24, %27, %cst_16 {dimension_numbers = #tpu.dot_dimension_numbers<[1], [0], [0], [1], [0, 0, 1, 1], [], []>} : vector<8x128xf32>, vector<128x128xf32>, vector<8x128xf32> -> vector<8x128xf32>
    %29 = arith.index_cast %c1_i32 : i32 to index
    %c0_17 = arith.constant 0 : index
    %c0_18 = arith.constant 0 : index
    %30 = vector.load %arg5[%29, %c0_17, %c0_18] : memref<3x1x128xf32, #tpu.memory_space<vmem>>, vector<1x1x128xf32>
    %31 = vector.shape_cast %30 : vector<1x1x128xf32> to vector<1x128xf32>
    %32 = vector.broadcast %31 : vector<1x128xf32> to vector<8x128xf32>
    %33 = arith.addf %28, %32 : vector<8x128xf32>
    %cst_19 = arith.constant 0.000000e+00 : f32
    %34 = vector.broadcast %cst_19 : f32 to vector<8x128xf32>
    %35 = arith.cmpf oge, %33, %34 : vector<8x128xf32>
    %cst_20 = arith.constant 0.00999999977 : f32
    %36 = vector.broadcast %cst_20 : f32 to vector<8x128xf32>
    %37 = arith.mulf %36, %33 : vector<8x128xf32>
    %38 = arith.select %35, %33, %37 : vector<8x128xi1>, vector<8x128xf32>
    %c2_i32 = arith.constant 2 : i32
    %39 = arith.index_cast %c2_i32 : i32 to index
    %c0_21 = arith.constant 0 : index
    %c0_22 = arith.constant 0 : index
    %40 = vector.load %arg4[%39, %c0_21, %c0_22] : memref<3x128x128xf32, #tpu.memory_space<vmem>>, vector<1x128x128xf32>
    %41 = vector.shape_cast %40 : vector<1x128x128xf32> to vector<128x128xf32>
    %cst_23 = arith.constant dense<0.000000e+00> : vector<8x128xf32>
    %42 = tpu.matmul %38, %41, %cst_23 {dimension_numbers = #tpu.dot_dimension_numbers<[1], [0], [0], [1], [0, 0, 1, 1], [], []>} : vector<8x128xf32>, vector<128x128xf32>, vector<8x128xf32> -> vector<8x128xf32>
    %43 = arith.index_cast %c2_i32 : i32 to index
    %c0_24 = arith.constant 0 : index
    %c0_25 = arith.constant 0 : index
    %44 = vector.load %arg5[%43, %c0_24, %c0_25] : memref<3x1x128xf32, #tpu.memory_space<vmem>>, vector<1x1x128xf32>
    %45 = vector.shape_cast %44 : vector<1x1x128xf32> to vector<1x128xf32>
    %46 = vector.broadcast %45 : vector<1x128xf32> to vector<8x128xf32>
    %47 = arith.addf %42, %46 : vector<8x128xf32>
    %cst_26 = arith.constant 0.000000e+00 : f32
    %48 = vector.broadcast %cst_26 : f32 to vector<8x128xf32>
    %49 = arith.cmpf oge, %47, %48 : vector<8x128xf32>
    %cst_27 = arith.constant 0.00999999977 : f32
    %50 = vector.broadcast %cst_27 : f32 to vector<8x128xf32>
    %51 = arith.mulf %50, %47 : vector<8x128xf32>
    %52 = arith.select %49, %47, %51 : vector<8x128xi1>, vector<8x128xf32>
    %c3_i32 = arith.constant 3 : i32
    %c0_28 = arith.constant 0 : index
    %c0_29 = arith.constant 0 : index
    %53 = vector.load %arg6[%c0_28, %c0_29] : memref<128x128xf32, #tpu.memory_space<vmem>>, vector<128x128xf32>
    %cst_30 = arith.constant dense<0.000000e+00> : vector<8x128xf32>
    %54 = tpu.matmul %52, %53, %cst_30 {dimension_numbers = #tpu.dot_dimension_numbers<[1], [0], [0], [1], [0, 0, 1, 1], [], []>} : vector<8x128xf32>, vector<128x128xf32>, vector<8x128xf32> -> vector<8x128xf32>
    %c0_31 = arith.constant 0 : index
    %c0_32 = arith.constant 0 : index
    %55 = vector.load %arg7[%c0_31, %c0_32] : memref<1x128xf32, #tpu.memory_space<vmem>>, vector<1x128xf32>
    %56 = vector.broadcast %55 : vector<1x128xf32> to vector<8x128xf32>
    %57 = arith.addf %54, %56 : vector<8x128xf32>
    %c0_33 = arith.constant 0 : index
    %c0_34 = arith.constant 0 : index
    %58 = vector.load %arg8[%c0_33, %c0_34] : memref<8x128xf32, #tpu.memory_space<vmem>>, vector<8x128xf32>
    tpu.vector_store %arg8[%c0_33, %c0_34], %57 {strides = array<i32>} : memref<8x128xf32, #tpu.memory_space<vmem>>, vector<8x128xf32>,
    return
  }
  func.func @transform_0(%arg0: i32) -> (i32, i32) {
    %c0_i32 = arith.constant 0 : i32
    %c0_i32_0 = arith.constant 0 : i32
    return %arg0, %c0_i32 : i32, i32
  }
  func.func @transform_1(%arg0: i32) -> (i32, i32) {
    %c0_i32 = arith.constant 0 : i32
    %c0_i32_0 = arith.constant 0 : i32
    %c0_i32_1 = arith.constant 0 : i32
    return %c0_i32, %c0_i32_0 : i32, i32
  }
  func.func @transform_2(%arg0: i32) -> (i32, i32) {
    %c0_i32 = arith.constant 0 : i32
    %c0_i32_0 = arith.constant 0 : i32
    %c0_i32_1 = arith.constant 0 : i32
    return %c0_i32, %c0_i32_0 : i32, i32
  }
  func.func @transform_3(%arg0: i32) -> (i32, i32, i32) {
    %c0_i32 = arith.constant 0 : i32
    %c0_i32_0 = arith.constant 0 : i32
    %c0_i32_1 = arith.constant 0 : i32
    %c0_i32_2 = arith.constant 0 : i32
    return %c0_i32, %c0_i32_0, %c0_i32_1 : i32, i32, i32
  }
  func.func @transform_4(%arg0: i32) -> (i32, i32, i32) {
    %c0_i32 = arith.constant 0 : i32
    %c0_i32_0 = arith.constant 0 : i32
    %c0_i32_1 = arith.constant 0 : i32
    %c0_i32_2 = arith.constant 0 : i32
    return %c0_i32, %c0_i32_0, %c0_i32_1 : i32, i32, i32
  }
  func.func @transform_5(%arg0: i32) -> (i32, i32) {
    %c0_i32 = arith.constant 0 : i32
    %c0_i32_0 = arith.constant 0 : i32
    %c0_i32_1 = arith.constant 0 : i32
    return %c0_i32, %c0_i32_0 : i32, i32
  }
  func.func @transform_6(%arg0: i32) -> (i32, i32) {
    %c0_i32 = arith.constant 0 : i32
    %c0_i32_0 = arith.constant 0 : i32
    %c0_i32_1 = arith.constant 0 : i32
    return %c0_i32, %c0_i32_0 : i32, i32
  }
  func.func @transform_7(%arg0: i32) -> (i32, i32) {
    %c0_i32 = arith.constant 0 : i32
    %c0_i32_0 = arith.constant 0 : i32
    return %arg0, %c0_i32 : i32, i32
  }
}

</mosaic_0001>

<bundles_post_ra>
// kernel: tpu_custom_call.1
= control target key start
LH: loop header
LB: loop body
LE: loop exit
PB: predicated region body
PF: predicated region fallthrough
CT: control target
= control target key end

     0   :  { %12 = vsyncpa [#allocation3], 0  ;;  %s1142_s0 = inlined_call_operand.hbm [shape: f32[8,128], index: 0, kind: input, shape index: {}]   ;;  %s1143_s1 = inlined_call_operand.hbm [shape: f32[128,128], index: 1, kind: input, shape index: {}]   ;;  %s1144_s2 = inlined_call_operand.vmem [shape: f32[1,128], index: 2, kind: input, shape index: {}]   ;;  %s1145_s3 = inlined_call_operand.hbm [shape: f32[3,128,128], index: 3, kind: input, shape index: {}]   ;;  %s1146_s4 = inlined_call_operand.vmem [shape: f32[3,1,128], index: 4, kind: input, shape index: {}]   ;;  %s1147_s5 = inlined_call_operand.hbm [shape: f32[128,128], index: 5, kind: input, shape index: {}]   ;;  %s1148_s6 = inlined_call_operand.vmem [shape: f32[1,128], index: 6, kind: input, shape index: {}]   ;;  %s1149_s7 = inlined_call_operand.hbm [shape: f32[8,128], index: 7, kind: output, shape index: {}]  }
   0x1   :  { %13 = vsyncpa [#allocation6], 0 }
   0x2   :  { %14 = vsyncpa [#allocation9], 0 }
   0x3   :  { %15 = vsyncpa [#allocation4], 0  ;;  %s964_s24 = smov [#allocation5]  }
   0x4   :  { %s31_s25 = sshll.u32 %s964_s24, 4  ;;  %s32_s25 = int_to_ptr.vmem [resolvable:$true] %s31_s25 }
   0x5   :  { %s864_s26 = scalar_lea.vmem %s32_s25, 2048  ;;  %p869_p1 = scmp.lt.s32.totalorder %s32_s25, %s32_s25 }
   0x6   :  { %p865_p0 = scmp.ne.s32.totalorder %s32_s25, %s864_s26  ;;  %p870_p2 = scmp.lt.s32.totalorder %s864_s26, %s864_s26 }
   0x8   :  { %p871_p3 = por %p870_p2, %p869_p1 }
   0xa   :  { %p872_p4 = pnand %p871_p3, %p865_p0 }
   0xc   :  { %875 = shalt.err (!%p872_p4)
}
   0xd   :  { %s965_s27 = smov 128   ;;  %s966_s28 = smov 8  }
   0xe   :  { %37 = dma.hbm_to_vmem [thread:$0]  %s1143_s1, 2048, %s32_s25, [#allocation6], %s965_s27, %s965_s27, %s966_s28  }
   0xf   :  { %s967_s8 = smov [#allocation2]   ;;  %s968_s10 = smov [#allocation7]  }
  0x10   :  { %s22_s9 = sshll.u32 %s967_s8, 4  ;;  %s45_s11 = sshll.u32 %s968_s10, 4  ;;  %s23_s9 = int_to_ptr.vmem [resolvable:$true] %s22_s9  ;;  %s46_s11 = int_to_ptr.vmem [resolvable:$true] %s45_s11 }
  0x11   :  { %s884_s12 = scalar_lea.vmem %s23_s9, 128  ;;  %p889_p6 = scmp.lt.s32.totalorder %s23_s9, %s23_s9 }
  0x12   :  { %p885_p5 = scmp.ne.s32.totalorder %s23_s9, %s884_s12  ;;  %p890_p7 = scmp.lt.s32.totalorder %s884_s12, %s884_s12 }
  0x14   :  { %p891_p8 = por %p890_p7, %p889_p6 }
  0x16   :  { %p892_p9 = pnand %p891_p8, %p885_p5 }
  0x18   :  { %895 = shalt.err (!%p892_p9)
}
  0x19   :  { %25 = dma.hbm_to_vmem [thread:$0]  %s1142_s0, 128, %s23_s9, [#allocation3]  }
  0x1a   :  { %s904_s15 = scalar_lea.vmem %s46_s11, 6144  ;;  %p909_p11 = scmp.lt.s32.totalorder %s46_s11, %s46_s11 }
  0x1b   :  { %p905_p10 = scmp.ne.s32.totalorder %s46_s11, %s904_s15  ;;  %p910_p12 = scmp.lt.s32.totalorder %s904_s15, %s904_s15 }
  0x1d   :  { %p911_p13 = por %p910_p12, %p909_p11 }
  0x1f   :  { %p912_p0 = pnand %p911_p13, %p905_p10 }
  0x21   :  { %915 = shalt.err (!%p912_p0)
}
  0x22   :  { %51 = dma.hbm_to_vmem [thread:$0]  %s1145_s3, 6144, %s46_s11, [#allocation6], %s965_s27, %s965_s27, %s966_s28  }
  0x23   :  { %s969_s17 = smov [#allocation8]  }
  0x24   :  { %s59_s18 = sshll.u32 %s969_s17, 4  ;;  %s60_s18 = int_to_ptr.vmem [resolvable:$true] %s59_s18 }
  0x25   :  { %s924_s19 = scalar_lea.vmem %s60_s18, 2048  ;;  %p929_p2 = scmp.lt.s32.totalorder %s60_s18, %s60_s18 }
  0x26   :  { %p925_p1 = scmp.ne.s32.totalorder %s60_s18, %s924_s19  ;;  %p930_p3 = scmp.lt.s32.totalorder %s924_s19, %s924_s19 }
  0x28   :  { %p931_p4 = por %p930_p3, %p929_p2 }
  0x2a   :  { %p932_p5 = pnand %p931_p4, %p925_p1 }
  0x2c   :  { %935 = shalt.err (!%p932_p5)
}
  0x2d   :  { %65 = dma.hbm_to_vmem [thread:$0]  %s1147_s5, 2048, %s60_s18, [#allocation9], %s965_s27, %s965_s27, %s966_s28  }
  0x2e   :  { %956 = dma.done.wait [#allocation3], 128  }
  0x2f   :  { %957 = vsyncadd [#allocation3], 4294967168 }
  0x30   :  { %958 = dma.done.wait [#allocation6], 8192  }
  0x31   :  { %959 = vsyncadd [#allocation6], 4294959104 }
  0x32   :  { %960 = dma.done.wait [#allocation9], 2048  }
  0x33   :  { %961 = vsyncadd [#allocation9], 4294965248  ;;  %v970_v0 = vmov 0.0   ;;  %vm971_vm0 = vmmov 0   ;;  %v96_v1 = vld [vmem:[#allocation5 + $0x78] sm:$0xff]  ;;  %v95_v2 = vld [vmem:[#allocation5 + $0x70] sm:$0xff] }
  0x34   :  { %672 = vmatprep.subr.mxu0 %v970_v0  ;;  %704 = vmatprep.mubr.msk.f32.mxu0 %vm971_vm0, %v970_v0  ;;  %v94_v3 = vld [vmem:[#allocation5 + $0x68] sm:$0xff]  ;;  %v93_v4 = vld [vmem:[#allocation5 + $0x60] sm:$0xff]  ;;  %v192_v5 = vld [vmem:[#allocation7 + $0x78] sm:$0xff]  ;;  %s972_s28 = smov [#allocation10]  }
  0x35   :  { %707 = vmatprep.subr.mxu1 %v970_v0  ;;  %739 = vmatprep.mubr.msk.f32.mxu1 %vm971_vm0, %v970_v0  ;;  %v92_v6 = vld [vmem:[#allocation5 + $0x58] sm:$0xff]  ;;  %v191_v7 = vld [vmem:[#allocation7 + $0x70] sm:$0xff]  ;;  %v190_v8 = vld [vmem:[#allocation7 + $0x68] sm:$0xff]  ;;  %s569_s29 = sshll.u32 %s972_s28, 4  ;;  %s570_s29 = int_to_ptr.vmem [resolvable:$true] %s569_s29 }
  0x36   :  { %673 = vmatpush3.msra.mxu0 %v96_v1  ;;  %708 = vmatpush3.msra.mxu1 %v192_v5  ;;  %v91_v9 = vld [vmem:[#allocation5 + $0x50] sm:$0xff]  ;;  %v189_v10 = vld [vmem:[#allocation7 + $0x60] sm:$0xff]  ;;  %v90_v11 = vld [vmem:[#allocation5 + $0x48] sm:$0xff]  ;;  %s936_s30 = scalar_lea.vmem %s570_s29, 128  ;;  %p941_p7 = scmp.lt.s32.totalorder %s570_s29, %s570_s29 }
  0x37   :  { %674 = vmatprep.subr.mxu0 %v970_v0  ;;  %709 = vmatprep.subr.mxu1 %v970_v0  ;;  %v188_v12 = vld [vmem:[#allocation7 + $0x58] sm:$0xff]  ;;  %v89_v13 = vld [vmem:[#allocation5 + $0x40] sm:$0xff]  ;;  %v187_v14 = vld [vmem:[#allocation7 + $0x50] sm:$0xff]  ;;  %p937_p6 = scmp.ne.s32.totalorder %s570_s29, %s936_s30  ;;  %p942_p8 = scmp.lt.s32.totalorder %s936_s30, %s936_s30 }
  0x38   :  { %675 = vmatpush3.msra.mxu0 %v95_v2  ;;  %710 = vmatpush3.msra.mxu1 %v191_v7  ;;  %v88_v15 = vld [vmem:[#allocation5 + $0x38] sm:$0xff]  ;;  %v186_v16 = vld [vmem:[#allocation7 + $0x48] sm:$0xff]  ;;  %v87_v17 = vld [vmem:[#allocation5 + $0x30] sm:$0xff] }
  0x39   :  { %676 = vmatprep.subr.mxu0 %v970_v0  ;;  %711 = vmatprep.subr.mxu1 %v970_v0  ;;  %v185_v18 = vld [vmem:[#allocation7 + $0x40] sm:$0xff]  ;;  %v86_v19 = vld [vmem:[#allocation5 + $0x28] sm:$0xff]  ;;  %v184_v20 = vld [vmem:[#allocation7 + $0x38] sm:$0xff]  ;;  %p943_p9 = por %p942_p8, %p941_p7 }
  0x3a   :  { %677 = vmatpush3.msra.mxu0 %v94_v3  ;;  %712 = vmatpush3.msra.mxu1 %v190_v8  ;;  %v85_v21 = vld [vmem:[#allocation5 + $0x20] sm:$0xff]  ;;  %v183_v22 = vld [vmem:[#allocation7 + $0x30] sm:$0xff]  ;;  %v84_v23 = vld [vmem:[#allocation5 + $0x18] sm:$0xff] }
  0x3b   :  { %678 = vmatprep.subr.mxu0 %v970_v0  ;;  %713 = vmatprep.subr.mxu1 %v970_v0  ;;  %v182_v24 = vld [vmem:[#allocation7 + $0x28] sm:$0xff]  ;;  %v83_v25 = vld [vmem:[#allocation5 + $0x10] sm:$0xff]  ;;  %v181_v26 = vld [vmem:[#allocation7 + $0x20] sm:$0xff]  ;;  %p944_p10 = pnand %p943_p9, %p937_p6 }
  0x3c   :  { %679 = vmatpush3.msra.mxu0 %v93_v4  ;;  %714 = vmatpush3.msra.mxu1 %v189_v10  ;;  %v82_v27 = vld [vmem:[#allocation5 + $0x8] sm:$0xff]  ;;  %v180_v28 = vld [vmem:[#allocation7 + $0x18] sm:$0xff]  ;;  %v81_v29 = vld [vmem:[#allocation5] sm:$0xff] }
  0x3d   :  { %680 = vmatprep.subr.mxu0 %v970_v0  ;;  %715 = vmatprep.subr.mxu1 %v970_v0  ;;  %v80_v30 = vld [vmem:[#allocation2] sm:$0xff]  ;;  %v179_v31 = vld [vmem:[#allocation7 + $0x10] sm:$0xff]  ;;  %v178_v32 = vld [vmem:[#allocation7 + $0x8] sm:$0xff] }
  0x3e   :  { %681 = vmatpush3.msra.mxu0 %v92_v6  ;;  %716 = vmatpush3.msra.mxu1 %v188_v12  ;;  %v177_v33 = vld [vmem:[#allocation7] sm:$0xff]  ;;  %v289_v34 = vld [vmem:[#allocation7 + $0xf8] sm:$0xff]  ;;  %v288_v35 = vld [vmem:[#allocation7 + $0xf0] sm:$0xff] }
  0x3f   :  { %682 = vmatprep.subr.mxu0 %v970_v0  ;;  %717 = vmatprep.subr.mxu1 %v970_v0  ;;  %v287_v36 = vld [vmem:[#allocation7 + $0xe8] sm:$0xff]  ;;  %v286_v37 = vld [vmem:[#allocation7 + $0xe0] sm:$0xff]  ;;  %v285_v38 = vld [vmem:[#allocation7 + $0xd8] sm:$0xff] }
  0x40   :  { %683 = vmatpush3.msra.mxu0 %v91_v9  ;;  %718 = vmatpush3.msra.mxu1 %v187_v14  ;;  %v284_v39 = vld [vmem:[#allocation7 + $0xd0] sm:$0xff]  ;;  %v283_v40 = vld [vmem:[#allocation7 + $0xc8] sm:$0xff]  ;;  %v282_v41 = vld [vmem:[#allocation7 + $0xc0] sm:$0xff] }
  0x41   :  { %684 = vmatprep.subr.mxu0 %v970_v0  ;;  %719 = vmatprep.subr.mxu1 %v970_v0  ;;  %v281_v42 = vld [vmem:[#allocation7 + $0xb8] sm:$0xff]  ;;  %v280_v43 = vld [vmem:[#allocation7 + $0xb0] sm:$0xff]  ;;  %v279_v44 = vld [vmem:[#allocation7 + $0xa8] sm:$0xff] }
  0x42   :  { %685 = vmatpush3.msra.mxu0 %v90_v11  ;;  %720 = vmatpush3.msra.mxu1 %v186_v16  ;;  %v278_v45 = vld [vmem:[#allocation7 + $0xa0] sm:$0xff]  ;;  %v277_v46 = vld [vmem:[#allocation7 + $0x98] sm:$0xff]  ;;  %v276_v53 = vld [vmem:[#allocation7 + $0x90] sm:$0xff] }
  0x43   :  { %686 = vmatprep.subr.mxu0 %v970_v0  ;;  %721 = vmatprep.subr.mxu1 %v970_v0  ;;  %v580_v47 = vld [vmem:[%s1144_s2] ss:$0 sm:$0xff]  ;;  %v275_v54 = vld [vmem:[#allocation7 + $0x88] sm:$0xff]  ;;  %v274_v55 = vld [vmem:[#allocation7 + $0x80] sm:$0xff] }
  0x44   :  { %687 = vmatpush3.msra.mxu0 %v89_v13  ;;  %722 = vmatpush3.msra.mxu1 %v185_v18  ;;  %v387_v56 = vld [vmem:[#allocation7 + $0x178] sm:$0xff]  ;;  %v386_v57 = vld [vmem:[#allocation7 + $0x170] sm:$0xff]  ;;  %v385_v58 = vld [vmem:[#allocation7 + $0x168] sm:$0xff] }
  0x45   :  { %688 = vmatprep.subr.mxu0 %v970_v0  ;;  %723 = vmatprep.subr.mxu1 %v970_v0  ;;  %v384_v59 = vld [vmem:[#allocation7 + $0x160] sm:$0xff]  ;;  %v383_v60 = vld [vmem:[#allocation7 + $0x158] sm:$0xff]  ;;  %v382_v61 = vld [vmem:[#allocation7 + $0x150] sm:$0xff] }
  0x46   :  { %689 = vmatpush3.msra.mxu0 %v88_v15  ;;  %724 = vmatpush3.msra.mxu1 %v184_v20  ;;  %v381_v62 = vld [vmem:[#allocation7 + $0x148] sm:$0xff]  ;;  %v380_v63 = vld [vmem:[#allocation7 + $0x140] sm:$0xff]  ;;  %v379_v1 = vld [vmem:[#allocation7 + $0x138] sm:$0xff] }
  0x47   :  { %690 = vmatprep.subr.mxu0 %v970_v0  ;;  %725 = vmatprep.subr.mxu1 %v970_v0  ;;  %v378_v2 = vld [vmem:[#allocation7 + $0x130] sm:$0xff]  ;;  %v377_v3 = vld [vmem:[#allocation7 + $0x128] sm:$0xff]  ;;  %v376_v4 = vld [vmem:[#allocation7 + $0x120] sm:$0xff] }
  0x48   :  { %691 = vmatpush3.msra.mxu0 %v87_v17  ;;  %726 = vmatpush3.msra.mxu1 %v183_v22  ;;  %v375_v5 = vld [vmem:[#allocation7 + $0x118] sm:$0xff]  ;;  %v374_v12 = vld [vmem:[#allocation7 + $0x110] sm:$0xff]  ;;  %v373_v13 = vld [vmem:[#allocation7 + $0x108] sm:$0xff] }
  0x49   :  { %692 = vmatprep.subr.mxu0 %v970_v0  ;;  %727 = vmatprep.subr.mxu1 %v970_v0  ;;  %v581_v6 = vld [vmem:[%s1146_s4] ss:$0 sm:$0xff]  ;;  %v372_v14 = vld [vmem:[#allocation7 + $0x100] sm:$0xff]  ;;  %v483_v16 = vld [vmem:[#allocation8 + $0x70] sm:$0xff] }
  0x4a   :  { %693 = vmatpush3.msra.mxu0 %v86_v19  ;;  %728 = vmatpush3.msra.mxu1 %v182_v24  ;;  %v484_v15 = vld [vmem:[#allocation8 + $0x78] sm:$0xff]  ;;  %v482_v17 = vld [vmem:[#allocation8 + $0x68] sm:$0xff]  ;;  %v481_v18 = vld [vmem:[#allocation8 + $0x60] sm:$0xff] }
  0x4b   :  { %694 = vmatprep.subr.mxu0 %v970_v0  ;;  %729 = vmatprep.subr.mxu1 %v970_v0  ;;  %v480_v19 = vld [vmem:[#allocation8 + $0x58] sm:$0xff]  ;;  %v479_v20 = vld [vmem:[#allocation8 + $0x50] sm:$0xff]  ;;  %v477_v22 = vld [vmem:[#allocation8 + $0x40] sm:$0xff] }
  0x4c   :  { %695 = vmatpush3.msra.mxu0 %v85_v21  ;;  %730 = vmatpush3.msra.mxu1 %v181_v26  ;;  %v478_v21 = vld [vmem:[#allocation8 + $0x48] sm:$0xff]  ;;  %v475_v24 = vld [vmem:[#allocation8 + $0x30] sm:$0xff]  ;;  %v473_v26 = vld [vmem:[#allocation8 + $0x20] sm:$0xff] }
  0x4d   :  { %696 = vmatprep.subr.mxu0 %v970_v0  ;;  %731 = vmatprep.subr.mxu1 %v970_v0 }
  0x4e   :  { %697 = vmatpush3.msra.mxu0 %v84_v23  ;;  %732 = vmatpush3.msra.mxu1 %v180_v28  ;;  %v476_v23 = vld [vmem:[#allocation8 + $0x38] sm:$0xff] }
  0x4f   :  { %698 = vmatprep.subr.mxu0 %v970_v0  ;;  %733 = vmatprep.subr.mxu1 %v970_v0  ;;  %v583_v28 = vld [vmem:[%s1146_s4 + $0x1] ss:$0 sm:$0xff] }
  0x50   :  { %699 = vmatpush3.msra.mxu0 %v83_v25  ;;  %734 = vmatpush3.msra.mxu1 %v179_v31  ;;  %v474_v25 = vld [vmem:[#allocation8 + $0x28] sm:$0xff] }
  0x51   :  { %700 = vmatprep.subr.mxu0 %v970_v0  ;;  %735 = vmatprep.subr.mxu1 %v970_v0 }
  0x52   :  { %701 = vmatpush3.msra.mxu0 %v82_v27  ;;  %736 = vmatpush3.msra.mxu1 %v178_v32  ;;  %v472_v27 = vld [vmem:[#allocation8 + $0x18] sm:$0xff] }
  0x53   :  { %702 = vmatprep.subr.mxu0 %v970_v0  ;;  %737 = vmatprep.subr.mxu1 %v970_v0 }
  0x54   :  { %703 = vmatpush3.msra.mxu0 %v81_v29  ;;  %738 = vmatpush3.msra.mxu1 %v177_v33 }
  0x55   :  { %705 = vmatmul.mubr.f32.vlgmr.msra.gmra.mxu0 %v80_v30  ;;  %742 = vmatprep.subr.mxu0 %v970_v0 }
  0x56   :  { %774 = vmatprep.mubr.msk.f32.mxu0 %vm971_vm0, %v970_v0  ;;  %777 = vmatprep.subr.mxu1 %v970_v0 }
  0x57   :  { %743 = vmatpush3.msra.mxu0 %v289_v34  ;;  %v471_v34 = vld [vmem:[#allocation8 + $0x10] sm:$0xff] }
  0x58   :  { %744 = vmatprep.subr.mxu0 %v970_v0 }
  0x59   :  { %745 = vmatpush3.msra.mxu0 %v288_v35  ;;  %v470_v35 = vld [vmem:[#allocation8 + $0x8] sm:$0xff] }
  0x5a   :  { %746 = vmatprep.subr.mxu0 %v970_v0 }
  0x5b   :  { %747 = vmatpush3.msra.mxu0 %v287_v36  ;;  %v469_v36 = vld [vmem:[#allocation8] sm:$0xff] }
  0x5c   :  { %748 = vmatprep.subr.mxu0 %v970_v0 }
  0x5d   :  { %749 = vmatpush3.msra.mxu0 %v286_v37  ;;  %v585_v37 = vld [vmem:[%s1146_s4 + $0x2] ss:$0 sm:$0xff] }
  0x5e   :  { %750 = vmatprep.subr.mxu0 %v970_v0 }
  0x5f   :  { %751 = vmatpush3.msra.mxu0 %v285_v38 }
  0x60   :  { %752 = vmatprep.subr.mxu0 %v970_v0 }
  0x61   :  { %753 = vmatpush3.msra.mxu0 %v284_v39 }
  0x62   :  { %754 = vmatprep.subr.mxu0 %v970_v0 }
  0x63   :  { %755 = vmatpush3.msra.mxu0 %v283_v40 }
  0x64   :  { %756 = vmatprep.subr.mxu0 %v970_v0 }
  0x65   :  { %757 = vmatpush3.msra.mxu0 %v282_v41 }
  0x66   :  { %758 = vmatprep.subr.mxu0 %v970_v0 }
  0x67   :  { %759 = vmatpush3.msra.mxu0 %v281_v42 }
  0x68   :  { %760 = vmatprep.subr.mxu0 %v970_v0 }
  0x69   :  { %761 = vmatpush3.msra.mxu0 %v280_v43  ;;  %v586_v43 = vld [vmem:[%s1148_s6] ss:$0 sm:$0xff] }
  0x6a   :  { %762 = vmatprep.subr.mxu0 %v970_v0 }
  0x6b   :  { %763 = vmatpush3.msra.mxu0 %v279_v44 }
  0x6c   :  { %764 = vmatprep.subr.mxu0 %v970_v0 }
  0x6d   :  { %765 = vmatpush3.msra.mxu0 %v278_v45 }
  0x6e   :  { %766 = vmatprep.subr.mxu0 %v970_v0 }
  0x6f   :  { %767 = vmatpush3.msra.mxu0 %v277_v46 }
  0x70   :  { %768 = vmatprep.subr.mxu0 %v970_v0 }
  0x71   :  { %769 = vmatpush3.msra.mxu0 %v276_v53 }
  0x72   :  { %770 = vmatprep.subr.mxu0 %v970_v0 }
  0x73   :  { %771 = vmatpush3.msra.mxu0 %v275_v54 }
  0x74   :  { %772 = vmatprep.subr.mxu0 %v970_v0 }
  0x75   :  { %773 = vmatpush3.msra.mxu0 %v274_v55 }
  0x76   :  { %812 = vmatprep.subr.mxu0 %v970_v0 }
 0x115   :  { %v170_v48 = vpop.f32.mrf.mxu0 }
 0x116   :  { %v171_v49 = vadd.f32 %v580_v47, %v170_v48 }
 0x117   :  { %v706_v50 = vpop.f32.mrf.mxu0 }
 0x118   :  { %v175_v51 = vmul.f32 0.01, %v171_v49  ;;  %vm174_vm1 = vcmp.ge.f32.partialorder %v171_v49, 0.0 }
 0x11a   :  { %v176_v52 = vsel %vm174_vm1, %v171_v49, %v175_v51 }
 0x11b   :  { %740 = vmatmul.mubr.f32.vlgmr.msra.gmra.mxu1 %v176_v52 }
 0x11c   :  { %809 = vmatprep.mubr.msk.f32.mxu1 %vm971_vm0, %v970_v0  ;;  %778 = vmatpush3.msra.mxu1 %v387_v56 }
 0x11d   :  { %779 = vmatprep.subr.mxu1 %v970_v0 }
 0x11e   :  { %780 = vmatpush3.msra.mxu1 %v386_v57 }
 0x11f   :  { %781 = vmatprep.subr.mxu1 %v970_v0 }
 0x120   :  { %782 = vmatpush3.msra.mxu1 %v385_v58 }
 0x121   :  { %783 = vmatprep.subr.mxu1 %v970_v0 }
 0x122   :  { %784 = vmatpush3.msra.mxu1 %v384_v59 }
 0x123   :  { %785 = vmatprep.subr.mxu1 %v970_v0 }
 0x124   :  { %786 = vmatpush3.msra.mxu1 %v383_v60 }
 0x125   :  { %787 = vmatprep.subr.mxu1 %v970_v0 }
 0x126   :  { %788 = vmatpush3.msra.mxu1 %v382_v61 }
 0x127   :  { %789 = vmatprep.subr.mxu1 %v970_v0 }
 0x128   :  { %790 = vmatpush3.msra.mxu1 %v381_v62 }
 0x129   :  { %791 = vmatprep.subr.mxu1 %v970_v0 }
 0x12a   :  { %792 = vmatpush3.msra.mxu1 %v380_v63 }
 0x12b   :  { %793 = vmatprep.subr.mxu1 %v970_v0 }
 0x12c   :  { %794 = vmatpush3.msra.mxu1 %v379_v1 }
 0x12d   :  { %795 = vmatprep.subr.mxu1 %v970_v0 }
 0x12e   :  { %796 = vmatpush3.msra.mxu1 %v378_v2 }
 0x12f   :  { %797 = vmatprep.subr.mxu1 %v970_v0 }
 0x130   :  { %798 = vmatpush3.msra.mxu1 %v377_v3 }
 0x131   :  { %799 = vmatprep.subr.mxu1 %v970_v0 }
 0x132   :  { %800 = vmatpush3.msra.mxu1 %v376_v4 }
 0x133   :  { %801 = vmatprep.subr.mxu1 %v970_v0 }
 0x134   :  { %802 = vmatpush3.msra.mxu1 %v375_v5 }
 0x135   :  { %803 = vmatprep.subr.mxu1 %v970_v0 }
 0x136   :  { %804 = vmatpush3.msra.mxu1 %v374_v12 }
 0x137   :  { %805 = vmatprep.subr.mxu1 %v970_v0 }
 0x138   :  { %806 = vmatpush3.msra.mxu1 %v373_v13 }
 0x139   :  { %807 = vmatprep.subr.mxu1 %v970_v0 }
 0x13a   :  { %808 = vmatpush3.msra.mxu1 %v372_v14 }
 0x1db   :  { %v266_v7 = vpop.f32.mrf.mxu1 }
 0x1dc   :  { %v267_v8 = vadd.f32 %v581_v6, %v266_v7 }
 0x1dd   :  { %v741_v9 = vpop.f32.mrf.mxu1 }
 0x1de   :  { %vm270_vm2 = vcmp.ge.f32.partialorder %v267_v8, 0.0  ;;  %v271_v10 = vmul.f32 0.01, %v267_v8 }
 0x1e0   :  { %v272_v11 = vsel %vm270_vm2, %v267_v8, %v271_v10 }
 0x1e1   :  { %775 = vmatmul.mubr.f32.vlgmr.msra.gmra.mxu0 %v272_v11 }
 0x1e2   :  { %844 = vmatprep.mubr.msk.f32.mxu0 %vm971_vm0, %v970_v0  ;;  %813 = vmatpush3.msra.mxu0 %v484_v15 }
 0x1e3   :  { %814 = vmatprep.subr.mxu0 %v970_v0 }
 0x1e4   :  { %815 = vmatpush3.msra.mxu0 %v483_v16 }
 0x1e5   :  { %816 = vmatprep.subr.mxu0 %v970_v0 }
 0x1e6   :  { %817 = vmatpush3.msra.mxu0 %v482_v17 }
 0x1e7   :  { %818 = vmatprep.subr.mxu0 %v970_v0 }
 0x1e8   :  { %819 = vmatpush3.msra.mxu0 %v481_v18 }
 0x1e9   :  { %820 = vmatprep.subr.mxu0 %v970_v0 }
 0x1ea   :  { %821 = vmatpush3.msra.mxu0 %v480_v19 }
 0x1eb   :  { %822 = vmatprep.subr.mxu0 %v970_v0 }
 0x1ec   :  { %823 = vmatpush3.msra.mxu0 %v479_v20 }
 0x1ed   :  { %824 = vmatprep.subr.mxu0 %v970_v0 }
 0x1ee   :  { %825 = vmatpush3.msra.mxu0 %v478_v21 }
 0x1ef   :  { %826 = vmatprep.subr.mxu0 %v970_v0 }
 0x1f0   :  { %827 = vmatpush3.msra.mxu0 %v477_v22 }
 0x1f1   :  { %828 = vmatprep.subr.mxu0 %v970_v0 }
 0x1f2   :  { %829 = vmatpush3.msra.mxu0 %v476_v23 }
 0x1f3   :  { %830 = vmatprep.subr.mxu0 %v970_v0 }
 0x1f4   :  { %831 = vmatpush3.msra.mxu0 %v475_v24 }
 0x1f5   :  { %832 = vmatprep.subr.mxu0 %v970_v0 }
 0x1f6   :  { %833 = vmatpush3.msra.mxu0 %v474_v25 }
 0x1f7   :  { %834 = vmatprep.subr.mxu0 %v970_v0 }
 0x1f8   :  { %835 = vmatpush3.msra.mxu0 %v473_v26 }
 0x1f9   :  { %836 = vmatprep.subr.mxu0 %v970_v0 }
 0x1fa   :  { %837 = vmatpush3.msra.mxu0 %v472_v27 }
 0x1fb   :  { %838 = vmatprep.subr.mxu0 %v970_v0 }
 0x1fc   :  { %839 = vmatpush3.msra.mxu0 %v471_v34 }
 0x1fd   :  { %840 = vmatprep.subr.mxu0 %v970_v0 }
 0x1fe   :  { %841 = vmatpush3.msra.mxu0 %v470_v35 }
 0x1ff   :  { %842 = vmatprep.subr.mxu0 %v970_v0 }
 0x200   :  { %843 = vmatpush3.msra.mxu0 %v469_v36 }
 0x2a1   :  { %v364_v29 = vpop.f32.mrf.mxu0 }
 0x2a2   :  { %v365_v30 = vadd.f32 %v583_v28, %v364_v29 }
 0x2a3   :  { %v776_v31 = vpop.f32.mrf.mxu0 }
 0x2a4   :  { %vm368_vm3 = vcmp.ge.f32.partialorder %v365_v30, 0.0  ;;  %v369_v32 = vmul.f32 0.01, %v365_v30 }
 0x2a6   :  { %v370_v33 = vsel %vm368_vm3, %v365_v30, %v369_v32 }
 0x2a7   :  { %810 = vmatmul.mubr.f32.vlgmr.msra.gmra.mxu1 %v370_v33 }
 0x367   :  { %v462_v38 = vpop.f32.mrf.mxu1 }
 0x368   :  { %v463_v39 = vadd.f32 %v585_v37, %v462_v38 }
 0x369   :  { %v811_v40 = vpop.f32.mrf.mxu1 }
 0x36a   :  { %vm466_vm4 = vcmp.ge.f32.partialorder %v463_v39, 0.0  ;;  %v467_v41 = vmul.f32 0.01, %v463_v39 }
 0x36c   :  { %v468_v42 = vsel %vm466_vm4, %v463_v39, %v467_v41 }
 0x36d   :  { %845 = vmatmul.mubr.f32.vlgmr.msra.gmra.mxu0 %v468_v42 }
 0x42d   :  { %v558_v44 = vpop.f32.mrf.mxu0 }
 0x42e   :  { %v559_v0 = vadd.f32 %v586_v43, %v558_v44 }
 0x42f   :  { %v846_v45 = vpop.f32.mrf.mxu0 }
 0x430   :  { %562 = vst [vmem:[#allocation10] sm:$0xff] %v559_v0 }
 0x431   :  { %947 = shalt.err (!%p944_p10)
}
 0x432   :  { %572 = dma.vmem_to_hbm [thread:$0]  %s570_s29, 128, %s1149_s7, [#allocation4]  }
 0x433   :  { %962 = dma.done.wait [#allocation4], 128  }
 0x434   :  { %963 = vsyncadd [#allocation4], 4294967168 }
 0x435   :  { %576 = vsyncpa [#allocation3], 1 }
 0x436   :  { %577 = vsyncpa [#allocation6], 1 }
 0x437   :  { %578 = vsyncpa [#allocation9], 1 }
 0x438   :  { %579 = vsyncpa [#allocation4], 1 }

</bundles_post_ra>
